<compile_context>
chip_gen: v7x
topology: tpu7x:2x2x1
jax: 0.10.0
libtpu: 0.0.40
codegen_flags: <defaults>
</compile_context>

<pallas_src>
import functools

import jax
import jax.numpy as jnp
from jax.experimental import pallas as pl
from jax.experimental.pallas import tpu as pltpu

NUM_CLASSES = 5
NUM_CORES = 2              # v7x has 2 TensorCores; harmless on 1-core chips
TILE_LANES_MAX = 32768     # rows (lanes) per grid step; ~4-5 MiB VMEM total,
                           # fits v5e's 16 MiB default scoped-VMEM limit

# Class weights from the PyTorch module's __init__ (deterministic constants).
CLASS_WEIGHTS = jnp.array(
    [0.07903392, 0.47365554, 0.06655968, 0.19538417, 0.18536669],
    dtype=jnp.float32,
)


def _fold128(v):
    """Tree-sum a (1, tile) value into (1, 128) using vreg-aligned static slices."""
    tile = v.shape[-1]
    parts = [v[:, j * 128:(j + 1) * 128] for j in range(tile // 128)]
    while len(parts) > 1:
        nxt = [a + b for a, b in zip(parts[0::2], parts[1::2])]
        if len(parts) % 2:
            nxt.append(parts[-1])
        parts = nxt
    return parts[0]


def _ce_kernel(n_rows, logits_ref, tgt_ref, w_ref, num_ref, den_ref,
               num_acc_ref, den_acc_ref):
    core = pl.program_id(0)
    i = pl.program_id(1)
    bpc = pl.num_programs(1)

    @pl.when(i == 0)
    def _():
        num_acc_ref[...] = jnp.zeros_like(num_acc_ref)
        den_acc_ref[...] = jnp.zeros_like(den_acc_ref)

    x = logits_ref[...].astype(jnp.float32)          # (C, tile)
    tgt = tgt_ref[...]                               # (1, tile) int32
    w_col = w_ref[...]                               # (C, 1) f32
    c_dim, tile = x.shape

    # log-sum-exp over the class (sublane) axis -- only 5 real sublanes.
    m = jnp.max(x, axis=0, keepdims=True)                                 # (1, tile)
    lse = jnp.log(jnp.sum(jnp.exp(x - m), axis=0, keepdims=True)) + m     # (1, tile)

    # One-hot over class sublanes: gather the target logit and its class weight.
    cls_col = jax.lax.broadcasted_iota(jnp.int32, (c_dim, 1), 0)          # (C, 1)
    onehot = (cls_col == tgt).astype(jnp.float32)                         # (C, tile)
    logit_t = jnp.sum(x * onehot, axis=0, keepdims=True)                  # (1, tile)
    w = jnp.sum(w_col * onehot, axis=0, keepdims=True)                    # (1, tile)

    # Valid-row mask from the static total row count (padded rows -> weight 0).
    row0 = (core * bpc + i) * tile
    lane = jax.lax.broadcasted_iota(jnp.int32, (1, tile), 1)
    w = jnp.where(row0 + lane < n_rows, w, jnp.float32(0.0))

    nll_w = (lse - logit_t) * w                                           # (1, tile)

    # Lane-wise partial sums folded into (1,128); no cross-lane reduce per step.
    num_acc_ref[...] += _fold128(nll_w)
    den_acc_ref[...] += _fold128(w)

    @pl.when(i == bpc - 1)
    def _():
        num_ref[...] = num_acc_ref[...]
        den_ref[...] = den_acc_ref[...]


def _round_up(n, m):
    return ((n + m - 1) // m) * m


def _cdiv(a, b):
    return (a + b - 1) // b


@jax.jit
def classify_loss(output, target):
    """output: (B, T, C) float logits; target: (B, T) int class ids."""
    B, T, C = output.shape
    assert C == NUM_CLASSES
    N = B * T

    # Ragged-friendly tiling: per-step padding bounded by <128 rows, then pad the
    # block count to a multiple of NUM_CORES so the parallel axis splits evenly.
    n_blocks = max(1, _cdiv(N, TILE_LANES_MAX))
    tile = _round_up(_cdiv(N, n_blocks), 128)
    n_blocks = _round_up(_cdiv(N, tile), NUM_CORES)
    n_pad = n_blocks * tile
    bpc = n_blocks // NUM_CORES

    # Single transpose + lane-only pad (fused by XLA); keep the input dtype
    # (cast to f32 happens inside the kernel).  No class/sublane padding.
    logits_t = jnp.pad(output.reshape(N, C).T, ((0, 0), (0, n_pad - N)))  # (C, n_pad)
    tgt_pad = jnp.pad(target.reshape(N).astype(jnp.int32),
                      (0, n_pad - N)).reshape(1, n_pad)                   # (1, n_pad)
    w_col = CLASS_WEIGHTS.reshape(C, 1)                                   # (C, 1)

    cost = pl.CostEstimate(
        flops=10 * N * C,
        transcendentals=(C + 1) * N,
        bytes_accessed=N * C * output.dtype.itemsize + N * 4,
    )

    num, den = pl.pallas_call(
        functools.partial(_ce_kernel, N),
        out_shape=(
            jax.ShapeDtypeStruct((1, NUM_CORES * 128), jnp.float32),
            jax.ShapeDtypeStruct((1, NUM_CORES * 128), jnp.float32),
        ),
        grid_spec=pltpu.PrefetchScalarGridSpec(
            num_scalar_prefetch=0,
            grid=(NUM_CORES, bpc),
            in_specs=[
                pl.BlockSpec((C, tile), lambda c, i: (0, c * bpc + i)),
                pl.BlockSpec((1, tile), lambda c, i: (0, c * bpc + i)),
                pl.BlockSpec((C, 1), lambda c, i: (0, 0)),
            ],
            out_specs=[
                pl.BlockSpec((1, 128), lambda c, i: (0, c)),
                pl.BlockSpec((1, 128), lambda c, i: (0, c)),
            ],
            scratch_shapes=[
                pltpu.VMEM((1, 128), jnp.float32),
                pltpu.VMEM((1, 128), jnp.float32),
            ],
        ),
        compiler_params=pltpu.CompilerParams(
            dimension_semantics=("parallel", "arbitrary"),
        ),
        cost_estimate=cost,
    )(logits_t, tgt_pad, w_col)

    return jnp.sum(num) / jnp.sum(den)


def _reference(output, target):
    # pure-JAX reference of F.cross_entropy(output.permute(0,2,1), target,
    #                                       reduction='mean', weight=w)
    B, T, C = output.shape
    x = output.reshape(B * T, C).astype(jnp.float32)
    t = target.reshape(B * T).astype(jnp.int32)
    lse = jax.nn.logsumexp(x, axis=-1)
    nll = lse - jnp.take_along_axis(x, t[:, None], axis=-1)[:, 0]
    w_t = CLASS_WEIGHTS[t]
    return jnp.sum(nll * w_t) / jnp.sum(w_t)


if __name__ == "__main__":
    key = jax.random.PRNGKey(0)
    k1, k2 = jax.random.split(key)
    B, T, C = 2, 8, NUM_CLASSES
    output = jax.random.normal(k1, (B, T, C), dtype=jnp.float32)
    target = jax.random.randint(k2, (B, T), 0, C, dtype=jnp.int32)

    loss = classify_loss(output, target)
    jax.block_until_ready(loss)

    ref = _reference(output, target)
    assert jnp.allclose(loss, ref, rtol=1e-5, atol=1e-5), (loss, ref)
    print("KERNEL_OK")
</pallas_src>

<mosaic_0001>
module attributes {stable_mosaic.version = 11 : i64} {
  func.func @_ce_kernel(%arg0: i32, %arg1: i32, %arg2: memref<5x128xf32, #tpu.memory_space<vmem>>, %arg3: memref<1x128xi32, #tpu.memory_space<vmem>>, %arg4: memref<5x1xf32, #tpu.memory_space<vmem>>, %arg5: memref<1x128xf32, #tpu.memory_space<vmem>>, %arg6: memref<1x128xf32, #tpu.memory_space<vmem>>, %arg7: memref<1x128xf32, #tpu.memory_space<vmem>>, %arg8: memref<1x128xf32, #tpu.memory_space<vmem>>) attributes {dimension_semantics = [#tpu.dimension_semantics<parallel>, #tpu.dimension_semantics<arbitrary>], iteration_bounds = array<i64: 2, 1>, scalar_prefetch = 0 : i64, scratch_operands = 2 : i64, tpu.core_type = #tpu.core_type<tc>, window_params = [{transform_indices = @transform_0, window_bounds = array<i64: 5, 128>}, {transform_indices = @transform_1, window_bounds = array<i64: 1, 128>}, {pipeline_mode = #tpu.pipeline_mode<synchronous>, transform_indices = @transform_2, window_bounds = array<i64: 5, 1>}, {transform_indices = @transform_3, window_bounds = array<i64: 1, 128>}, {transform_indices = @transform_4, window_bounds = array<i64: 1, 128>}]} {
    %c0_i32 = arith.constant 0 : i32
    %0 = arith.cmpi eq, %arg1, %c0_i32 : i32
    %1 = arith.extui %0 : i1 to i32
    %c0_i32_0 = arith.constant 0 : i32
    %2 = arith.cmpi ne, %1, %c0_i32_0 : i32
    scf.if %2 {
      %cst_20 = arith.constant 0.000000e+00 : f32
      %49 = vector.broadcast %cst_20 : f32 to vector<1x128xf32>
      %c0_21 = arith.constant 0 : index
      %c0_22 = arith.constant 0 : index
      %50 = vector.load %arg7[%c0_21, %c0_22] : memref<1x128xf32, #tpu.memory_space<vmem>>, vector<1x128xf32>
      tpu.vector_store %arg7[%c0_21, %c0_22], %49 {strides = array<i32>} : memref<1x128xf32, #tpu.memory_space<vmem>>, vector<1x128xf32>,
      %cst_23 = arith.constant 0.000000e+00 : f32
      %51 = vector.broadcast %cst_23 : f32 to vector<1x128xf32>
      %c0_24 = arith.constant 0 : index
      %c0_25 = arith.constant 0 : index
      %52 = vector.load %arg8[%c0_24, %c0_25] : memref<1x128xf32, #tpu.memory_space<vmem>>, vector<1x128xf32>
      tpu.vector_store %arg8[%c0_24, %c0_25], %51 {strides = array<i32>} : memref<1x128xf32, #tpu.memory_space<vmem>>, vector<1x128xf32>,
    } else {
    }
    %c0 = arith.constant 0 : index
    %c0_1 = arith.constant 0 : index
    %3 = vector.load %arg2[%c0, %c0_1] : memref<5x128xf32, #tpu.memory_space<vmem>>, vector<5x128xf32>
    %c0_2 = arith.constant 0 : index
    %c0_3 = arith.constant 0 : index
    %4 = vector.load %arg3[%c0_2, %c0_3] : memref<1x128xi32, #tpu.memory_space<vmem>>, vector<1x128xi32>
    %c0_4 = arith.constant 0 : index
    %c0_5 = arith.constant 0 : index
    %5 = vector.load %arg4[%c0_4, %c0_5] : memref<5x1xf32, #tpu.memory_space<vmem>>, vector<5x1xf32>
    %cst = arith.constant dense<0xFF800000> : vector<128xf32>
    %6 = vector.multi_reduction <maximumf>, %3, %cst [0] : vector<5x128xf32> to vector<128xf32>
    %7 = vector.shape_cast %6 : vector<128xf32> to vector<1x128xf32>
    %8 = vector.broadcast %7 : vector<1x128xf32> to vector<5x128xf32>
    %9 = arith.subf %3, %8 : vector<5x128xf32>
    %10 = math.exp %9 : vector<5x128xf32>
    %cst_6 = arith.constant dense<0.000000e+00> : vector<128xf32>
    %11 = vector.multi_reduction <add>, %10, %cst_6 [0] : vector<5x128xf32> to vector<128xf32>
    %12 = vector.shape_cast %11 : vector<128xf32> to vector<1x128xf32>
    %13 = math.log %12 : vector<1x128xf32>
    %14 = arith.addf %13, %7 : vector<1x128xf32>
    %15 = tpu.iota {dimensions = array<i32: 0>} : vector<5x1xi32>
    %16 = vector.broadcast %15 : vector<5x1xi32> to vector<5x128xi32>
    %17 = vector.broadcast %4 : vector<1x128xi32> to vector<5x128xi32>
    %18 = arith.cmpi eq, %16, %17 : vector<5x128xi32>
    %19 = arith.extui %18 : vector<5x128xi1> to vector<5x128xi32>
    %20 = arith.sitofp %19 : vector<5x128xi32> to vector<5x128xf32>
    %21 = arith.mulf %3, %20 : vector<5x128xf32>
    %cst_7 = arith.constant dense<0.000000e+00> : vector<128xf32>
    %22 = vector.multi_reduction <add>, %21, %cst_7 [0] : vector<5x128xf32> to vector<128xf32>
    %23 = vector.shape_cast %22 : vector<128xf32> to vector<1x128xf32>
    %24 = vector.broadcast %5 : vector<5x1xf32> to vector<5x128xf32>
    %25 = arith.mulf %24, %20 : vector<5x128xf32>
    %cst_8 = arith.constant dense<0.000000e+00> : vector<128xf32>
    %26 = vector.multi_reduction <add>, %25, %cst_8 [0] : vector<5x128xf32> to vector<128xf32>
    %27 = vector.shape_cast %26 : vector<128xf32> to vector<1x128xf32>
    %c1_i32 = arith.constant 1 : i32
    %28 = arith.muli %arg0, %c1_i32 : i32
    %29 = arith.addi %28, %arg1 : i32
    %c128_i32 = arith.constant 128 : i32
    %30 = arith.muli %29, %c128_i32 : i32
    %31 = tpu.iota {dimensions = array<i32: 1>} : vector<1x128xi32>
    %32 = vector.broadcast %30 : i32 to vector<1x128xi32>
    %33 = arith.addi %32, %31 : vector<1x128xi32>
    %c16_i32 = arith.constant 16 : i32
    %34 = vector.broadcast %c16_i32 : i32 to vector<1x128xi32>
    %35 = arith.cmpi slt, %33, %34 : vector<1x128xi32>
    %cst_9 = arith.constant 0.000000e+00 : f32
    %36 = vector.broadcast %cst_9 : f32 to vector<1x128xf32>
    %37 = arith.select %35, %27, %36 : vector<1x128xi1>, vector<1x128xf32>
    %38 = arith.subf %14, %23 : vector<1x128xf32>
    %39 = arith.mulf %38, %37 : vector<1x128xf32>
    %c0_10 = arith.constant 0 : index
    %c0_11 = arith.constant 0 : index
    %40 = vector.load %arg7[%c0_10, %c0_11] : memref<1x128xf32, #tpu.memory_space<vmem>>, vector<1x128xf32>
    %41 = arith.addf %40, %39 : vector<1x128xf32>
    %c0_12 = arith.constant 0 : index
    %c0_13 = arith.constant 0 : index
    %42 = vector.load %arg7[%c0_12, %c0_13] : memref<1x128xf32, #tpu.memory_space<vmem>>, vector<1x128xf32>
    tpu.vector_store %arg7[%c0_12, %c0_13], %41 {strides = array<i32>} : memref<1x128xf32, #tpu.memory_space<vmem>>, vector<1x128xf32>,
    %c0_14 = arith.constant 0 : index
    %c0_15 = arith.constant 0 : index
    %43 = vector.load %arg8[%c0_14, %c0_15] : memref<1x128xf32, #tpu.memory_space<vmem>>, vector<1x128xf32>
    %44 = arith.addf %43, %37 : vector<1x128xf32>
    %c0_16 = arith.constant 0 : index
    %c0_17 = arith.constant 0 : index
    %45 = vector.load %arg8[%c0_16, %c0_17] : memref<1x128xf32, #tpu.memory_space<vmem>>, vector<1x128xf32>
    tpu.vector_store %arg8[%c0_16, %c0_17], %44 {strides = array<i32>} : memref<1x128xf32, #tpu.memory_space<vmem>>, vector<1x128xf32>,
    %c0_i32_18 = arith.constant 0 : i32
    %46 = arith.cmpi eq, %arg1, %c0_i32_18 : i32
    %47 = arith.extui %46 : i1 to i32
    %c0_i32_19 = arith.constant 0 : i32
    %48 = arith.cmpi ne, %47, %c0_i32_19 : i32
    scf.if %48 {
      %c0_20 = arith.constant 0 : index
      %c0_21 = arith.constant 0 : index
      %49 = vector.load %arg7[%c0_20, %c0_21] : memref<1x128xf32, #tpu.memory_space<vmem>>, vector<1x128xf32>
      %c0_22 = arith.constant 0 : index
      %c0_23 = arith.constant 0 : index
      %50 = vector.load %arg5[%c0_22, %c0_23] : memref<1x128xf32, #tpu.memory_space<vmem>>, vector<1x128xf32>
      tpu.vector_store %arg5[%c0_22, %c0_23], %49 {strides = array<i32>} : memref<1x128xf32, #tpu.memory_space<vmem>>, vector<1x128xf32>,
      %c0_24 = arith.constant 0 : index
      %c0_25 = arith.constant 0 : index
      %51 = vector.load %arg8[%c0_24, %c0_25] : memref<1x128xf32, #tpu.memory_space<vmem>>, vector<1x128xf32>
      %c0_26 = arith.constant 0 : index
      %c0_27 = arith.constant 0 : index
      %52 = vector.load %arg6[%c0_26, %c0_27] : memref<1x128xf32, #tpu.memory_space<vmem>>, vector<1x128xf32>
      tpu.vector_store %arg6[%c0_26, %c0_27], %51 {strides = array<i32>} : memref<1x128xf32, #tpu.memory_space<vmem>>, vector<1x128xf32>,
    } else {
    }
    return
  }
  func.func @transform_0(%arg0: i32, %arg1: i32) -> (i32, i32) {
    %c1_i32 = arith.constant 1 : i32
    %0 = arith.muli %arg0, %c1_i32 : i32
    %1 = arith.addi %0, %arg1 : i32
    %c0_i32 = arith.constant 0 : i32
    %c0_i32_0 = arith.constant 0 : i32
    return %c0_i32, %1 : i32, i32
  }
  func.func @transform_1(%arg0: i32, %arg1: i32) -> (i32, i32) {
    %c1_i32 = arith.constant 1 : i32
    %0 = arith.muli %arg0, %c1_i32 : i32
    %1 = arith.addi %0, %arg1 : i32
    %c0_i32 = arith.constant 0 : i32
    %c0_i32_0 = arith.constant 0 : i32
    return %c0_i32, %1 : i32, i32
  }
  func.func @transform_2(%arg0: i32, %arg1: i32) -> (i32, i32) {
    %c0_i32 = arith.constant 0 : i32
    %c0_i32_0 = arith.constant 0 : i32
    %c0_i32_1 = arith.constant 0 : i32
    return %c0_i32, %c0_i32_0 : i32, i32
  }
  func.func @transform_3(%arg0: i32, %arg1: i32) -> (i32, i32) {
    %c0_i32 = arith.constant 0 : i32
    %c0_i32_0 = arith.constant 0 : i32
    return %c0_i32, %arg0 : i32, i32
  }
  func.func @transform_4(%arg0: i32, %arg1: i32) -> (i32, i32) {
    %c0_i32 = arith.constant 0 : i32
    %c0_i32_0 = arith.constant 0 : i32
    return %c0_i32, %arg0 : i32, i32
  }
}

</mosaic_0001>

<bundles_post_ra>
// kernel: classify_loss.1
= control target key start
LH: loop header
LB: loop body
LE: loop exit
PB: predicated region body
PF: predicated region fallthrough
CT: control target
= control target key end

     0   :  { %s505_s15 = smov 0   ;;  %s507_s16 = smov 0   ;;  %s562_s0 = inlined_call_operand.vmem [shape: f32[5,256], index: 0, kind: input, shape index: {}]   ;;  %s563_s1 = inlined_call_operand.vmem [shape: s32[1,256], index: 1, kind: input, shape index: {}]   ;;  %s564_s2 = inlined_call_operand.vmem [shape: f32[5,1], index: 2, kind: input, shape index: {}]   ;;  %s565_s3 = inlined_call_operand.vmem [shape: f32[1,256], index: 3, kind: output, shape index: {0}]   ;;  %s566_s4 = inlined_call_operand.vmem [shape: f32[1,256], index: 4, kind: output, shape index: {1}]  }
   0x1   :  { %s509_s17 = smov 0  }
   0x2 LB: > { %s27_s18 = sadd.s32 1, %s472_s16  ;;  %p416_p0 = scmp.ge.s32.totalorder %s476_s17, 1  ;;  %s476_s17 = sphi %s509_s17, %s15_s17   ;;  %s472_s16 = sphi %s507_s16, %s568_s16   ;;  %s468_s15 = sphi %s505_s15, %s567_s15  }
   0x3   : > { %p29_p1 = scmp.ge.s32.totalorder %s27_s18, 2  ;;  %p192_p2 = scmp.lt.s32.totalorder %s476_s17, 3 }
   0x5   : > { %s570_s18 = smov (%p29_p1, %s27_s18), 0  ;;  %p193_p3 = pnand %p416_p0, %p192_p2 }
   0x6   : > { %v248_v0 = vld [vmem:[%s564_s2] sm:$0x1f] (!%p193_p3)  ;;  %v478_v1 = vmov (!%p193_p3), 0   ;;  %v479_v2 = vmov (!%p193_p3), 0.0   ;;  %p224_p4 = scmp.lt.s32.totalorder (!%p193_p3), %s468_s15, 1  ;;  %vm249_vm0 = vcmask (!%p193_p3), 1044480   ;;  %v270_v15 = vlaneseq (!%p193_p3) }
   0x7   : > { %196 = sbr.rel (%p193_p3) target bundleno = 165 (0xa5), region = 32  ;;  %449 = vset.pattern.permute.xlu0 (!%p193_p3), %v478_v1  ;;  %244 = vst [vmem:[#allocation2] sm:$0x1] (!%p193_p3), %v479_v2  ;;  %245 = vst [vmem:[#allocation3] sm:$0x1] (!%p193_p3), %v479_v2  ;;  %s420_s29 = sshll.u32 (!%p193_p3), %s468_s15, 7 }
   0x8   : > { %289 = vperm.xlu0 (!%p193_p3), %449, %v248_v0   ;;  %v271_v17 = vshrl.u32 (!%p193_p3), %v270_v15, 7  ;;  %v303_v36 = vand.u32 (!%p193_p3), 127, %v270_v15  ;;  %v304_v39 = vstv (!%p193_p3), %s420_s29 }
   0xa   : > { %v305_v42 = vadd.s32 (!%p193_p3), %v304_v39, %v303_v36 }
   0xc   : > { %vm306_vm2 = vcmp.lt.s32.totalorder (!%p193_p3), %v305_v42, 16 }
   0xe   : > { %s530_s21 = scalar_select %p224_p4, %s468_s15, 1  ;;  %v313_v49 = vld [vmem:[#allocation3] sm:$0x1]  ;;  %v310_v51 = vld [vmem:[#allocation2] sm:$0x1] }
  0x10   : > { %s417_s22 = sshll.u32 %s530_s21, 3  ;;  %s232_s28 = scalar_lea.vmem %s563_s1, %s530_s21 }
  0x11   : > { %s227_s25 = scalar_lea.vmem %s562_s0, %s417_s22  ;;  %v418_v19 = vld [vmem:[%s232_s28] ss:$0 sm:$0xff]  ;;  %s239_s6 = scalar_lea.vmem %s566_s4, %s530_s21 }
  0x12   : > { %v246_v3 = vld [vmem:[%s227_s25] sm:$0x1f]  ;;  %vm276_vm1 = vcmp.eq.s32.totalorder %v271_v17, %v418_v19  ;;  %s236_s9 = scalar_lea.vmem %s565_s3, %s530_s21 }
  0x13   : > { %v250_v4 = vsel %vm249_vm0, %v246_v3, -inf  ;;  %v419_v21 = vsel %vm276_vm1, 1.0, %v479_v2 }
  0x14   : > { %v251_v5 = vrot.slane %v250_v4, 4  ;;  %v279_v23 = vmul.f32 %v419_v21, %v246_v3 }
  0x16   : > { %v252_v6 = vmax.f32 %v250_v4, %v251_v5  ;;  %v280_v25 = vsel %vm249_vm0, %v279_v23, 0.0 }
  0x17   : > { %v281_v27 = vrot.slane %v280_v25, 4 }
  0x18   : > { %v253_v7 = vrot.slane %v252_v6, 2 }
  0x19   : > { %v282_v28 = vadd.f32 %v281_v27, %v280_v25 }
  0x1a   : > { %v254_v8 = vmax.f32 %v252_v6, %v253_v7 }
  0x1b   : > { %v283_v29 = vrot.slane %v282_v28, 2 }
  0x1c   : > { %v255_v9 = vrot.slane %v254_v8, 1 }
  0x1d   : > { %v284_v31 = vadd.f32 %v283_v29, %v282_v28 }
  0x1e   : > { %v256_v10 = vmax.f32 %v254_v8, %v255_v9 }
  0x1f   : > { %v285_v38 = vrot.slane %v284_v31, 1 }
  0x20   : > { %v257_v11 = vsub.f32 %v246_v3, %v256_v10 }
  0x21   : > { %v286_v44 = vadd.f32 %v285_v38, %v284_v31 }
  0x22   : > { %v258_v12 = vmul.f32 1.442695, %v257_v11 }
  0x24   : > { %450 = vpow2.f32 %v258_v12 }
  0x2e   : > { %v451_v13 = vpop.eup %450 }
  0x2f   : > { %v260_v14 = vsel %vm249_vm0, %v451_v13, 0.0 }
  0x30   : > { %v261_v16 = vrot.slane %v260_v14, 4 }
  0x32   : > { %v262_v18 = vadd.f32 %v261_v16, %v260_v14 }
  0x34   : > { %v263_v20 = vrot.slane %v262_v18, 2 }
  0x36   : > { %v264_v22 = vadd.f32 %v263_v20, %v262_v18 }
  0x38   : > { %v265_v24 = vrot.slane %v264_v22, 1 }
  0x3a   : > { %v266_v26 = vadd.f32 %v265_v24, %v264_v22 }
  0x3c   : > { %452 = vlog2.f32 %v266_v26 }
  0x46   : > { %v453_v33 = vpop.eup %452 }
  0x47   : > { %v268_v37 = vmul.f32 0.6931472, %v453_v33 }
  0x49   : > { %v269_v43 = vadd.f32 %v268_v37, %v256_v10 }
  0x4b   : > { %v308_v47 = vsub.f32 %v269_v43, %v286_v44 }
  0x87   : > { %v290_v30 = vpop.permute.xlu0 %289 }
  0x88   : > { %v292_v32 = vmul.f32 %v419_v21, %v290_v30 }
  0x8a   : > { %v293_v34 = vsel %vm249_vm0, %v292_v32, 0.0 }
  0x8b   : > { %v294_v35 = vrot.slane %v293_v34, 4 }
  0x8d   : > { %v295_v40 = vadd.f32 %v294_v35, %v293_v34 }
  0x8f   : > { %v296_v41 = vrot.slane %v295_v40, 2 }
  0x91   : > { %v297_v45 = vadd.f32 %v296_v41, %v295_v40 }
  0x93   : > { %v298_v46 = vrot.slane %v297_v45, 1 }
  0x95   : > { %v299_v48 = vadd.f32 %v298_v46, %v297_v45 }
  0x97   : > { %v307_v50 = vsel %vm306_vm2, %v299_v48, 0.0 }
  0x98   : > { %v309_v52 = vmul.f32 %v308_v47, %v307_v50  ;;  %v314_v53 = vadd.f32 %v313_v49, %v307_v50 }
  0x9a   : > { %v311_v54 = vadd.f32 %v310_v51, %v309_v52  ;;  %315 = vst [vmem:[#allocation3] sm:$0x1] %v314_v53 }
  0x9c   : > { %312 = vst [vmem:[#allocation2] sm:$0x1] %v311_v54 }
  0xa1   : > { %v321_v55 = vld [vmem:[#allocation3] sm:$0x1] }
  0xa2   : > { %322 = vst [vmem:[%s239_s6] sm:$0x1] %v321_v55 }
  0xa3   : > { %v319_v56 = vld [vmem:[#allocation2] sm:$0x1] }
  0xa4   : > { %320 = vst [vmem:[%s236_s9] sm:$0x1] %v319_v56 }
  0xa5 PF: > { %s15_s17 = sadd.s32 1, %s476_s17   ;;  %s567_s15 = smov %s472_s16 }
  0xa6   : > { %p12_p5 = scmp.ge.s32.totalorder %s15_s17, 4   ;;  %s568_s16 = smov %s570_s18 }
  0xa8   :  { %14 = sbr.rel (!%p12_p5) target bundleno = 2 (0x2), region = 85 }

</bundles_post_ra>
